<compile_context>
chip_gen: v7x
topology: tpu7x:2x2x1
jax: 0.10.0
libtpu: 0.0.40
codegen_flags: <defaults>
</compile_context>

<pallas_src>
import functools

import jax
import jax.numpy as jnp
from jax import lax
from jax.experimental import pallas as pl
from jax.experimental.pallas import tpu as pltpu


def _round_up(x, m):
    return (x + m - 1) // m * m


def _vmem_limit_bytes(footprint):
    """Scoped-VMEM request: footprint + headroom, capped below physical VMEM."""
    try:
        cap = int(pltpu.get_tpu_info().vmem_capacity_bytes)  # 128 MiB v5e/v6e, 64 MiB/TC v7x
    except Exception:
        cap = 64 * 1024 * 1024
    hi = cap - (8 << 20)  # leave headroom for compiler-internal scratch / double buffers
    return int(max(16 << 20, min(hi, footprint + (16 << 20))))


def _rotate_embed_onehot_kernel(ids_ref, table_ref, q_ref, out_ref, *, compute_dtype):
    """One grid step: MXU one-hot gather + rotation (no per-row vld/vst loop).

    ids_ref   : VMEM (tq, 1) int32      -- this tile's token ids (pipelined block)
    table_ref : VMEM (vocab, hidden)    -- full table, resident, single-buffered
    q_ref     : VMEM (hidden, hidden)   -- rotation matrix, resident, single-buffered
    out_ref   : VMEM (tq, hidden)       -- lane-dense output tile
    """
    vocab = table_ref.shape[0]
    tq = out_ref.shape[0]

    ids = ids_ref[...]                                            # (tq, 1) int32
    cols = lax.broadcasted_iota(jnp.int32, (tq, vocab), 1)        # (tq, vocab)
    # Out-of-range ids match no column -> zero row (PyTorch would raise; we cannot).
    onehot = (ids == cols).astype(compute_dtype)                  # exact 0/1 values

    # Gather as a matmul: exact when compute_dtype covers table.dtype (default).
    rows = jnp.dot(onehot, table_ref[...].astype(compute_dtype),
                   preferred_element_type=jnp.float32)            # (tq, hidden) f32

    # Rotation; f32 MXU accumulation stands in for the torch f64 path.
    out_ref[...] = jnp.dot(rows.astype(compute_dtype),
                           q_ref[...].astype(compute_dtype),
                           preferred_element_type=jnp.float32).astype(out_ref.dtype)


def _rotate_embed_gather_kernel(ids_ref, table_ref, q_ref, out_ref, rows_ref, *,
                                tq, vocab, compute_dtype):
    """Fallback (vocab above the one-hot threshold, table still VMEM-resident):
    per-row gather into scratch, then one MXU matmul with Q.

    ids_ref    : SMEM (n_pad,) int32        -- scalar-prefetched token ids
    table_ref  : VMEM (vocab, hidden)       -- resident, single-buffered
    q_ref      : VMEM (hidden, hidden)      -- resident, single-buffered
    out_ref    : VMEM (tq, hidden)
    rows_ref   : VMEM (tq, hidden) scratch  -- gathered rows
    """
    base = pl.multiple_of(pl.program_id(0) * tq, tq)

    def gather_body(j, carry):
        tok = ids_ref[base + j]
        # Clamp in-kernel (dynamic VMEM reads have no bounds check).
        tok = jnp.minimum(jnp.maximum(tok, 0), vocab - 1)
        rows_ref[j, :] = table_ref[tok, :]
        return carry

    # Capped unroll to bound code size while giving the scheduler visibility.
    lax.fori_loop(0, tq, gather_body, 0, unroll=8)

    out_ref[...] = jnp.dot(rows_ref[...].astype(compute_dtype),
                           q_ref[...].astype(compute_dtype),
                           preferred_element_type=jnp.float32).astype(out_ref.dtype)


def rotate_embed(x, table, Q, *, tq=512, compute_dtype=None, max_onehot_vocab=2048):
    """Pallas implementation of RotateEmbed.forward.

    x     : (batch, seq) integer token ids
    table : (vocab, hidden) embedding weight
    Q     : (hidden, hidden) rotation matrix
    compute_dtype : matmul operand dtype (default: table.dtype). Pass jnp.bfloat16
                    for full bf16 MXU throughput with f32 accumulation.
    returns (batch, seq, hidden) in table.dtype
    """
    batch, seq = x.shape
    vocab, hidden = table.shape
    n = batch * seq

    if compute_dtype is None:
        compute_dtype = table.dtype
    compute_dtype = jnp.dtype(compute_dtype)

    # Token tile: large (per-step overhead amortization, deep MXU M), multiple of 8,
    # never larger than the padded token count.
    tq = max(8, min(_round_up(tq, 8), _round_up(n, 8)))
    n_pad = _round_up(n, tq)
    grid = (n_pad // tq,)

    ids = x.reshape(n).astype(jnp.int32)
    if n_pad != n:
        ids = jnp.pad(ids, (0, n_pad - n))   # pad tokens -> row 0, sliced off below

    t_item = jnp.dtype(table.dtype).itemsize
    q_item = jnp.dtype(Q.dtype).itemsize
    c_item = compute_dtype.itemsize

    use_onehot = vocab <= max_onehot_vocab

    if use_onehot:
        footprint = (
            vocab * hidden * t_item                 # table (resident, single-buffered)
            + hidden * hidden * q_item              # Q (resident, single-buffered)
            + 2 * tq * hidden * t_item              # double-buffered output tiles
            + 2 * tq * 4                            # double-buffered id tiles
            + tq * vocab * c_item                   # one-hot operand
            + tq * hidden * 4                       # f32 gathered rows
            + (vocab * hidden * c_item if compute_dtype != table.dtype else 0)
            + (hidden * hidden * c_item if compute_dtype != Q.dtype else 0)
        )
        out = pl.pallas_call(
            functools.partial(_rotate_embed_onehot_kernel, compute_dtype=compute_dtype),
            out_shape=jax.ShapeDtypeStruct((n_pad, hidden), table.dtype),
            grid=grid,
            in_specs=[
                pl.BlockSpec((tq, 1), lambda i: (i, 0)),                 # per-tile ids
                pl.BlockSpec(memory_space=pltpu.MemorySpace.VMEM),       # table resident
                pl.BlockSpec(memory_space=pltpu.MemorySpace.VMEM),       # Q resident
            ],
            out_specs=pl.BlockSpec((tq, hidden), lambda i: (i, 0)),
            compiler_params=pltpu.CompilerParams(
                dimension_semantics=("parallel",),
                vmem_limit_bytes=_vmem_limit_bytes(footprint),
            ),
        )(ids.reshape(n_pad, 1), table, Q)
    else:
        footprint = (
            vocab * hidden * t_item
            + hidden * hidden * q_item
            + 2 * tq * hidden * t_item
            + tq * hidden * t_item                  # gather scratch
            + (tq * hidden * c_item if compute_dtype != table.dtype else 0)
            + (hidden * hidden * c_item if compute_dtype != Q.dtype else 0)
        )
        out = pl.pallas_call(
            functools.partial(_rotate_embed_gather_kernel, tq=tq, vocab=vocab,
                              compute_dtype=compute_dtype),
            out_shape=jax.ShapeDtypeStruct((n_pad, hidden), table.dtype),
            grid_spec=pltpu.PrefetchScalarGridSpec(
                num_scalar_prefetch=1,
                grid=grid,
                in_specs=[
                    pl.BlockSpec(memory_space=pltpu.MemorySpace.VMEM),   # table resident
                    pl.BlockSpec(memory_space=pltpu.MemorySpace.VMEM),   # Q resident
                ],
                out_specs=pl.BlockSpec((tq, hidden), lambda i, ids_ref: (i, 0)),
                scratch_shapes=[pltpu.VMEM((tq, hidden), table.dtype)],
            ),
            compiler_params=pltpu.CompilerParams(
                dimension_semantics=("parallel",),
                vmem_limit_bytes=_vmem_limit_bytes(footprint),
            ),
        )(ids, table, Q)

    return out[:n].reshape(batch, seq, hidden)


def _reference(x, table, Q):
    ref = table[x.reshape(-1)].astype(jnp.float32) @ Q.astype(jnp.float32)
    return ref.reshape(*x.shape, table.shape[1]).astype(table.dtype)


if __name__ == "__main__":
    key = jax.random.PRNGKey(0)
    k_ids, k_emb, k_q, k_ids2 = jax.random.split(key, 4)

    vocab, hidden = 256, 128   # nn.Embedding(256, 128), Q: (128, 128)
    table = jax.random.normal(k_emb, (vocab, hidden), dtype=jnp.float32) * 0.02
    # Build a true rotation (orthogonal) matrix Q via QR, as the module expects.
    q_raw = jax.random.normal(k_q, (hidden, hidden), dtype=jnp.float32)
    Q, _ = jnp.linalg.qr(q_raw)
    Q = Q.astype(jnp.float32)

    # Case 1: small shapes consistent with the module (single tile, one-hot MXU path).
    batch, seq = 2, 8
    x = jax.random.randint(k_ids, (batch, seq), 0, vocab, dtype=jnp.int32)
    out = jax.block_until_ready(rotate_embed(x, table, Q))
    ref = _reference(x, table, Q)
    assert out.shape == (batch, seq, hidden)
    assert out.dtype == table.dtype
    assert jnp.allclose(out, ref, atol=2e-5, rtol=2e-5), "mismatch vs reference (case 1)"

    # Case 2: non-multiple token count -> padding + multi-tile grid (one-hot path).
    batch2, seq2 = 3, 50   # 150 tokens, tq=64 -> 3 tiles with a padded tail
    x2 = jax.random.randint(k_ids2, (batch2, seq2), 0, vocab, dtype=jnp.int32)
    out2 = jax.block_until_ready(rotate_embed(x2, table, Q, tq=64))
    ref2 = _reference(x2, table, Q)
    assert out2.shape == (batch2, seq2, hidden)
    assert jnp.allclose(out2, ref2, atol=2e-5, rtol=2e-5), "mismatch vs reference (case 2)"

    # Case 3: force the fallback per-row gather path (as used when vocab exceeds the
    # one-hot threshold but the table still fits in VMEM).
    out3 = jax.block_until_ready(rotate_embed(x2, table, Q, tq=64, max_onehot_vocab=0))
    assert jnp.allclose(out3, ref2, atol=2e-5, rtol=2e-5), "mismatch vs reference (case 3)"

    # Case 4: bf16 weights -> bf16 MXU operands with f32 accumulation.
    table_bf16 = table.astype(jnp.bfloat16)
    Q_bf16 = Q.astype(jnp.bfloat16)
    out4 = jax.block_until_ready(rotate_embed(x, table_bf16, Q_bf16))
    ref4 = (table_bf16[x.reshape(-1)].astype(jnp.float32)
            @ Q_bf16.astype(jnp.float32)).reshape(batch, seq, hidden).astype(jnp.bfloat16)
    assert out4.dtype == jnp.bfloat16
    assert jnp.allclose(out4.astype(jnp.float32), ref4.astype(jnp.float32),
                        atol=1e-3, rtol=2e-2), "mismatch vs reference (case 4, bf16)"

    print("KERNEL_OK")
</pallas_src>

<mosaic_0001>
module attributes {stable_mosaic.version = 11 : i64} {
  func.func @_rotate_embed_onehot_kernel(%arg0: i32, %arg1: memref<16x1xi32, #tpu.memory_space<vmem>>, %arg2: memref<256x128xf32, #tpu.memory_space<vmem>>, %arg3: memref<128x128xf32, #tpu.memory_space<vmem>>, %arg4: memref<16x128xf32, #tpu.memory_space<vmem>>) attributes {dimension_semantics = [#tpu.dimension_semantics<parallel>], iteration_bounds = array<i64: 1>, scalar_prefetch = 0 : i64, scratch_operands = 0 : i64, tpu.core_type = #tpu.core_type<tc>, window_params = [{transform_indices = @transform_0, window_bounds = array<i64: 16, 1>}, {pipeline_mode = #tpu.pipeline_mode<synchronous>, transform_indices = @transform_1, window_bounds = array<i64: 256, 128>}, {pipeline_mode = #tpu.pipeline_mode<synchronous>, transform_indices = @transform_2, window_bounds = array<i64: 128, 128>}, {transform_indices = @transform_3, window_bounds = array<i64: 16, 128>}]} {
    %c0 = arith.constant 0 : index
    %c0_0 = arith.constant 0 : index
    %0 = vector.load %arg1[%c0, %c0_0] : memref<16x1xi32, #tpu.memory_space<vmem>>, vector<16x1xi32>
    %1 = tpu.iota {dimensions = array<i32: 1>} : vector<16x256xi32>
    %2 = vector.broadcast %0 : vector<16x1xi32> to vector<16x256xi32>
    %3 = arith.cmpi eq, %2, %1 : vector<16x256xi32>
    %4 = arith.extui %3 : vector<16x256xi1> to vector<16x256xi32>
    %5 = arith.sitofp %4 : vector<16x256xi32> to vector<16x256xf32>
    %c0_1 = arith.constant 0 : index
    %c0_2 = arith.constant 0 : index
    %6 = vector.load %arg2[%c0_1, %c0_2] : memref<256x128xf32, #tpu.memory_space<vmem>>, vector<256x128xf32>
    %cst = arith.constant dense<0.000000e+00> : vector<16x128xf32>
    %7 = tpu.matmul %5, %6, %cst {dimension_numbers = #tpu.dot_dimension_numbers<[1], [0], [0], [1], [0, 0, 1, 1], [], []>} : vector<16x256xf32>, vector<256x128xf32>, vector<16x128xf32> -> vector<16x128xf32>
    %c0_3 = arith.constant 0 : index
    %c0_4 = arith.constant 0 : index
    %8 = vector.load %arg3[%c0_3, %c0_4] : memref<128x128xf32, #tpu.memory_space<vmem>>, vector<128x128xf32>
    %cst_5 = arith.constant dense<0.000000e+00> : vector<16x128xf32>
    %9 = tpu.matmul %7, %8, %cst_5 {dimension_numbers = #tpu.dot_dimension_numbers<[1], [0], [0], [1], [0, 0, 1, 1], [], []>} : vector<16x128xf32>, vector<128x128xf32>, vector<16x128xf32> -> vector<16x128xf32>
    %c0_6 = arith.constant 0 : index
    %c0_7 = arith.constant 0 : index
    %10 = vector.load %arg4[%c0_6, %c0_7] : memref<16x128xf32, #tpu.memory_space<vmem>>, vector<16x128xf32>
    tpu.vector_store %arg4[%c0_6, %c0_7], %9 {strides = array<i32>} : memref<16x128xf32, #tpu.memory_space<vmem>>, vector<16x128xf32>,
    return
  }
  func.func @transform_0(%arg0: i32) -> (i32, i32) {
    %c0_i32 = arith.constant 0 : i32
    %c0_i32_0 = arith.constant 0 : i32
    return %arg0, %c0_i32 : i32, i32
  }
  func.func @transform_1(%arg0: i32) -> (i32, i32) {
    %c0_i32 = arith.constant 0 : i32
    %c0_i32_0 = arith.constant 0 : i32
    %c0_i32_1 = arith.constant 0 : i32
    return %c0_i32, %c0_i32_0 : i32, i32
  }
  func.func @transform_2(%arg0: i32) -> (i32, i32) {
    %c0_i32 = arith.constant 0 : i32
    %c0_i32_0 = arith.constant 0 : i32
    %c0_i32_1 = arith.constant 0 : i32
    return %c0_i32, %c0_i32_0 : i32, i32
  }
  func.func @transform_3(%arg0: i32) -> (i32, i32) {
    %c0_i32 = arith.constant 0 : i32
    %c0_i32_0 = arith.constant 0 : i32
    return %arg0, %c0_i32 : i32, i32
  }
}

</mosaic_0001>

<bundles_post_ra>
// kernel: tpu_custom_call.1
= control target key start
LH: loop header
LB: loop body
LE: loop exit
PB: predicated region body
PF: predicated region fallthrough
CT: control target
= control target key end

     0   :  { %8 = vsyncpa [#allocation3], 0  ;;  %s605_s0 = inlined_call_operand.vmem [shape: s32[16,1], index: 0, kind: input, shape index: {}]   ;;  %s606_s1 = inlined_call_operand.hbm [shape: f32[256,128], index: 1, kind: input, shape index: {}]   ;;  %s607_s2 = inlined_call_operand.hbm [shape: f32[128,128], index: 2, kind: input, shape index: {}]   ;;  %s608_s3 = inlined_call_operand.hbm [shape: f32[16,128], index: 3, kind: output, shape index: {}]  }
   0x1   :  { %9 = vsyncpa [#allocation6], 0 }
   0x2   :  { %10 = vsyncpa [#allocation4], 0  ;;  %s527_s12 = smov [#allocation2]   ;;  %s455_s16 = scalar_lea.hbm %s606_s1, 4096 }
   0x3   :  { %s18_s13 = sshll.u32 %s527_s12, 4  ;;  %p456_p0 = scmp.ne.s32.totalorder %s606_s1, %s455_s16  ;;  %s19_s13 = int_to_ptr.vmem [resolvable:$true] %s18_s13 }
   0x4   :  { %p459_p1 = scmp.lt.u32.totalorder %s455_s16, %s606_s1 }
   0x6   :  { %p461_p2 = pnand %p459_p1, %p456_p0 }
   0x8   :  { %464 = shalt.err (!%p461_p2)
}
   0x9   :  { %s465_s21 = scalar_lea.vmem %s19_s13, 4096  ;;  %p470_p4 = scmp.lt.s32.totalorder %s19_s13, %s19_s13 }
   0xa   :  { %p466_p3 = scmp.ne.s32.totalorder %s19_s13, %s465_s21  ;;  %p471_p5 = scmp.lt.s32.totalorder %s465_s21, %s465_s21 }
   0xc   :  { %p472_p6 = por %p471_p5, %p470_p4 }
   0xe   :  { %p473_p7 = pnand %p472_p6, %p466_p3 }
  0x10   :  { %476 = shalt.err (!%p473_p7)
}
  0x11   :  { %s528_s22 = smov 128   ;;  %s529_s23 = smov 8  }
  0x12   :  { %24 = dma.hbm_to_vmem [thread:$0]  %s606_s1, 4096, %s19_s13, [#allocation3], %s528_s22, %s528_s22, %s529_s23  }
  0x13   :  { %s530_s26 = smov [#allocation5]   ;;  %s477_s30 = scalar_lea.hbm %s607_s2, 2048 }
  0x14   :  { %s30_s27 = sshll.u32 %s530_s26, 4  ;;  %p478_p8 = scmp.ne.s32.totalorder %s607_s2, %s477_s30  ;;  %s31_s27 = int_to_ptr.vmem [resolvable:$true] %s30_s27 }
  0x15   :  { %p481_p9 = scmp.lt.u32.totalorder %s477_s30, %s607_s2 }
  0x17   :  { %p483_p10 = pnand %p481_p9, %p478_p8 }
  0x19   :  { %486 = shalt.err (!%p483_p10)
}
  0x1a   :  { %s487_s8 = scalar_lea.vmem %s31_s27, 2048  ;;  %p492_p12 = scmp.lt.s32.totalorder %s31_s27, %s31_s27 }
  0x1b   :  { %p488_p11 = scmp.ne.s32.totalorder %s31_s27, %s487_s8  ;;  %p493_p13 = scmp.lt.s32.totalorder %s487_s8, %s487_s8 }
  0x1d   :  { %p494_p0 = por %p493_p13, %p492_p12 }
  0x1f   :  { %p495_p1 = pnand %p494_p0, %p488_p11 }
  0x21   :  { %498 = shalt.err (!%p495_p1)
}
  0x22   :  { %36 = dma.hbm_to_vmem [thread:$0]  %s607_s2, 2048, %s31_s27, [#allocation6], %s528_s22, %s528_s22, %s529_s23  }
  0x23   :  { %521 = dma.done.wait [#allocation3], 4096  }
  0x24   :  { %522 = vsyncadd [#allocation3], 4294963200 }
  0x25   :  { %523 = dma.done.wait [#allocation6], 2048  }
  0x26   :  { %524 = vsyncadd [#allocation6], 4294965248  ;;  %v531_v0 = vmov 0   ;;  %v43_v1 = vld [vmem:[%s605_s0] sm:$0xff]  ;;  %v44_v2 = vld [vmem:[%s605_s0 + $0x8] sm:$0xff]  ;;  %s533_s0 = smov [#allocation7]  }
  0x27   :  { %454 = vset.pattern.permute.xlu0 %v531_v0  ;;  %v82_v3 = vld [vmem:[#allocation2 + $0x80] sm:$0xff]  ;;  %v83_v4 = vld [vmem:[#allocation2 + $0x88] sm:$0xff]  ;;  %v84_v9 = vld [vmem:[#allocation2 + $0x90] sm:$0xff]  ;;  %s271_s2 = sshll.u32 %s533_s0, 4  ;;  %s272_s2 = int_to_ptr.vmem [resolvable:$true] %s271_s2 }
  0x28   :  { %49 = vperm.xlu0 %454, %v43_v1   ;;  %v66_v5 = vld [vmem:[#allocation2] sm:$0xff]  ;;  %v67_v6 = vld [vmem:[#allocation2 + $0x8] sm:$0xff]  ;;  %v383_v7 = vpack.c.bf16 %v83_v4, %v82_v3  ;;  %v85_v10 = vld [vmem:[#allocation2 + $0x98] sm:$0xff]  ;;  %s499_s14 = scalar_lea.vmem %s272_s2, 256  ;;  %p504_p3 = scmp.lt.s32.totalorder %s272_s2, %s272_s2 }
  0x29   :  { %v385_v8 = vpack.c.bf16 %v67_v6, %v66_v5  ;;  %v68_v11 = vld [vmem:[#allocation2 + $0x10] sm:$0xff]  ;;  %v387_v12 = vpack.c.bf16 %v85_v10, %v84_v9  ;;  %v69_v13 = vld [vmem:[#allocation2 + $0x18] sm:$0xff]  ;;  %v86_v14 = vld [vmem:[#allocation2 + $0xa0] sm:$0xff]  ;;  %v45_v5 = vlaneseq  ;;  %v532_v9 = vmov 1.0   ;;  %p500_p2 = scmp.ne.s32.totalorder %s272_s2, %s499_s14  ;;  %p505_p4 = scmp.lt.s32.totalorder %s499_s14, %s499_s14 }
  0x2a   :  { %v87_v15 = vld [vmem:[#allocation2 + $0xa8] sm:$0xff]  ;;  %384 = vmatprep.subr.bf16.mxu0 %v383_v7  ;;  %v389_v16 = vpack.c.bf16 %v69_v13, %v68_v11  ;;  %v70_v18 = vld [vmem:[#allocation2 + $0x20] sm:$0xff]  ;;  %v88_v20 = vld [vmem:[#allocation2 + $0xb0] sm:$0xff] }
  0x2b   :  { %386 = vmatpush3.bf16.msra.mxu0 %v385_v8  ;;  %v391_v17 = vpack.c.bf16 %v87_v15, %v86_v14  ;;  %v71_v19 = vld [vmem:[#allocation2 + $0x28] sm:$0xff]  ;;  %v89_v21 = vld [vmem:[#allocation2 + $0xb8] sm:$0xff]  ;;  %v72_v24 = vld [vmem:[#allocation2 + $0x30] sm:$0xff]  ;;  %v46_v6 = vand.u32 127, %v45_v5  ;;  %p506_p5 = por %p505_p4, %p504_p3 }
  0x2c   :  { %52 = vperm.xlu0 %454, %v44_v2   ;;  %388 = vmatprep.subr.bf16.mxu0 %v387_v12  ;;  %v393_v22 = vpack.c.bf16 %v71_v19, %v70_v18  ;;  %v395_v23 = vpack.c.bf16 %v89_v21, %v88_v20  ;;  %v73_v25 = vld [vmem:[#allocation2 + $0x38] sm:$0xff]  ;;  %v90_v26 = vld [vmem:[#allocation2 + $0xc0] sm:$0xff]  ;;  %v91_v27 = vld [vmem:[#allocation2 + $0xc8] sm:$0xff] }
  0x2d   :  { %v173_v28 = vld [vmem:[#allocation5] sm:$0xff]  ;;  %v174_v29 = vld [vmem:[#allocation5 + $0x8] sm:$0xff]  ;;  %v175_v31 = vld [vmem:[#allocation5 + $0x10] sm:$0xff]  ;;  %v397_v33 = vpack.c.bf16 %v73_v25, %v72_v24  ;;  %v399_v37 = vpack.c.bf16 %v91_v27, %v90_v26  ;;  %v47_v7 = vadd.s32 128, %v46_v6  ;;  %p507_p6 = pnand %p506_p5, %p500_p2 }
  0x2e   :  { %v415_v30 = vpack.c.bf16 %v174_v29, %v173_v28  ;;  %v176_v32 = vld [vmem:[#allocation5 + $0x18] sm:$0xff]  ;;  %v177_v35 = vld [vmem:[#allocation5 + $0x20] sm:$0xff]  ;;  %v178_v36 = vld [vmem:[#allocation5 + $0x28] sm:$0xff] }
  0x2f   :  { %390 = vmatpush3.bf16.msra.mxu0 %v389_v16  ;;  %v419_v34 = vpack.c.bf16 %v176_v32, %v175_v31  ;;  %v74_v38 = vld [vmem:[#allocation2 + $0x40] sm:$0xff]  ;;  %v75_v39 = vld [vmem:[#allocation2 + $0x48] sm:$0xff]  ;;  %v92_v40 = vld [vmem:[#allocation2 + $0xd0] sm:$0xff]  ;;  %v423_v42 = vpack.c.bf16 %v178_v36, %v177_v35 }
  0x30   :  { %392 = vmatprep.subr.bf16.mxu0 %v391_v17  ;;  %416 = vmatprep.subr.bf16.mxu1 %v415_v30  ;;  %v93_v41 = vld [vmem:[#allocation2 + $0xd8] sm:$0xff]  ;;  %v401_v43 = vpack.c.bf16 %v75_v39, %v74_v38  ;;  %v179_v44 = vld [vmem:[#allocation5 + $0x30] sm:$0xff]  ;;  %v94_v49 = vld [vmem:[#allocation2 + $0xe0] sm:$0xff] }
  0x31   :  { %418 = vmatpush3.bf16.msra.mxu1 %v415_v30  ;;  %v180_v45 = vld [vmem:[#allocation5 + $0x38] sm:$0xff]  ;;  %v403_v46 = vpack.c.bf16 %v93_v41, %v92_v40  ;;  %v76_v47 = vld [vmem:[#allocation2 + $0x50] sm:$0xff]  ;;  %v95_v50 = vld [vmem:[#allocation2 + $0xe8] sm:$0xff] }
  0x32   :  { %420 = vmatprep.subr.bf16.mxu1 %v419_v34  ;;  %v77_v48 = vld [vmem:[#allocation2 + $0x58] sm:$0xff]  ;;  %v427_v51 = vpack.c.bf16 %v180_v45, %v179_v44  ;;  %v181_v53 = vld [vmem:[#allocation5 + $0x40] sm:$0xff]  ;;  %v182_v54 = vld [vmem:[#allocation5 + $0x48] sm:$0xff]  ;;  %v407_v55 = vpack.c.bf16 %v95_v50, %v94_v49 }
  0x33   :  { %394 = vmatpush3.bf16.msra.mxu0 %v393_v22  ;;  %v405_v52 = vpack.c.bf16 %v77_v48, %v76_v47  ;;  %v78_v56 = vld [vmem:[#allocation2 + $0x60] sm:$0xff]  ;;  %v79_v57 = vld [vmem:[#allocation2 + $0x68] sm:$0xff]  ;;  %v96_v58 = vld [vmem:[#allocation2 + $0xf0] sm:$0xff]  ;;  %v431_v60 = vpack.c.bf16 %v182_v54, %v181_v53 }
  0x34   :  { %396 = vmatprep.subr.bf16.mxu0 %v395_v23  ;;  %v97_v59 = vld [vmem:[#allocation2 + $0xf8] sm:$0xff]  ;;  %v409_v61 = vpack.c.bf16 %v79_v57, %v78_v56  ;;  %v183_v62 = vld [vmem:[#allocation5 + $0x50] sm:$0xff]  ;;  %v185_v11 = vld [vmem:[#allocation5 + $0x60] sm:$0xff] }
  0x35   :  { %422 = vmatpush3.bf16.msra.mxu1 %v419_v34  ;;  %v184_v63 = vld [vmem:[#allocation5 + $0x58] sm:$0xff]  ;;  %v411_v0 = vpack.c.bf16 %v97_v59, %v96_v58  ;;  %v80_v1 = vld [vmem:[#allocation2 + $0x70] sm:$0xff]  ;;  %v186_v12 = vld [vmem:[#allocation5 + $0x68] sm:$0xff] }
  0x36   :  { %424 = vmatprep.subr.bf16.mxu1 %v423_v42  ;;  %v81_v2 = vld [vmem:[#allocation2 + $0x78] sm:$0xff]  ;;  %v435_v3 = vpack.c.bf16 %v184_v63, %v183_v62  ;;  %v439_v13 = vpack.c.bf16 %v186_v12, %v185_v11  ;;  %v187_v14 = vld [vmem:[#allocation5 + $0x70] sm:$0xff] }
  0x37   :  { %398 = vmatpush3.bf16.msra.mxu0 %v397_v33  ;;  %v413_v4 = vpack.c.bf16 %v81_v2, %v80_v1  ;;  %v188_v15 = vld [vmem:[#allocation5 + $0x78] sm:$0xff] }
  0x38   :  { %400 = vmatprep.subr.bf16.mxu0 %v399_v37  ;;  %v443_v16 = vpack.c.bf16 %v188_v15, %v187_v14 }
  0x39   :  { %426 = vmatpush3.bf16.msra.mxu1 %v423_v42 }
  0x3a   :  { %428 = vmatprep.subr.bf16.mxu1 %v427_v51 }
  0x3b   :  { %402 = vmatpush3.bf16.msra.mxu0 %v401_v43 }
  0x3c   :  { %404 = vmatprep.subr.bf16.mxu0 %v403_v46 }
  0x3d   :  { %430 = vmatpush3.bf16.msra.mxu1 %v427_v51 }
  0x3e   :  { %432 = vmatprep.subr.bf16.mxu1 %v431_v60 }
  0x3f   :  { %406 = vmatpush3.bf16.msra.mxu0 %v405_v52 }
  0x40   :  { %408 = vmatprep.subr.bf16.mxu0 %v407_v55 }
  0x41   :  { %434 = vmatpush3.bf16.msra.mxu1 %v431_v60 }
  0x42   :  { %436 = vmatprep.subr.bf16.mxu1 %v435_v3 }
  0x43   :  { %410 = vmatpush3.bf16.msra.mxu0 %v409_v61 }
  0x44   :  { %412 = vmatprep.subr.bf16.mxu0 %v411_v0 }
  0x45   :  { %438 = vmatpush3.bf16.msra.mxu1 %v435_v3 }
  0x46   :  { %440 = vmatprep.subr.bf16.mxu1 %v439_v13 }
  0x47   :  { %414 = vmatpush3.bf16.msra.mxu0 %v413_v4 }
  0x49   :  { %442 = vmatpush3.bf16.msra.mxu1 %v439_v13 }
  0x4a   :  { %444 = vmatprep.subr.bf16.mxu1 %v443_v16 }
  0x4d   :  { %446 = vmatpush3.bf16.msra.mxu1 %v443_v16 }
  0xa7   :  { %v50_v8 = vpop.permute.xlu0 %49 }
  0xa8   :  { %vm54_vm0 = vcmp.eq.s32.totalorder %v50_v8, %v46_v6  ;;  %vm55_vm1 = vcmp.eq.s32.totalorder %v50_v8, %v47_v7 }
  0xa9   :  { %288 = vmatprep.mubr.msk.f32.mxu0 %vm55_vm1, %v532_v9 }
  0xaa   :  { %289 = vmatmul.mubr.msk.f32.vlgmr.msra.gmra.mrb[0].mxu0 %vm54_vm0, %v532_v9 }
  0xab   :  { %v53_v10 = vpop.permute.xlu0 %52 }
  0xac   :  { %vm56_vm2 = vcmp.eq.s32.totalorder %v53_v10, %v46_v6  ;;  %vm57_vm3 = vcmp.eq.s32.totalorder %v53_v10, %v47_v7 }
  0xad   :  { %290 = vmatprep.mubr.msk.f32.mxu0 %vm57_vm3, %v532_v9 }
  0xae   :  { %291 = vmatmul.mubr.msk.f32.gmra.mrb[2].mxu0 %vm56_vm2, %v532_v9 }
 0x17d   :  { %v324_v17 = vpop.f32.mrb[0].mxu0 }
 0x17e   :  { %v325_v18 = vpop.f32.mrb[1].mxu0 }
 0x17f   :  { %v326_v19 = vadd.f32 %v325_v18, %v324_v17 }
 0x181   :  { %v327_v20 = vpop.f32.mrb[2].mxu0  ;;  %380 = vmatprep.mubr.f32.mxu1 %v326_v19 }
 0x182   :  { %v328_v21 = vpop.f32.mrb[3].mxu0 }
 0x183   :  { %v329_v22 = vadd.f32 %v328_v21, %v327_v20 }
 0x185   :  { %381 = vmatmul.mubr.f32.vlgmr.msra.gmra.mrb[0].mxu1 %v329_v22 }
 0x258   :  { %v382_v23 = vpop.f32.mrb[0].mxu1 }
 0x259   :  { %265 = vst [vmem:[#allocation7 + $0x8] sm:$0xff] %v382_v23  ;;  %v255_v24 = vpop.f32.mrb[1].mxu1 }
 0x25a   :  { %264 = vst [vmem:[#allocation7] sm:$0xff] %v255_v24 }
 0x25b   :  { %510 = shalt.err (!%p507_p6)
}
 0x25c   :  { %s511_s17 = scalar_lea.hbm %s608_s3, 256 }
 0x25d   :  { %p512_p7 = scmp.ne.s32.totalorder %s608_s3, %s511_s17  ;;  %p515_p8 = scmp.lt.u32.totalorder %s511_s17, %s608_s3 }
 0x25f   :  { %p517_p9 = pnand %p515_p8, %p512_p7 }
 0x261   :  { %520 = shalt.err (!%p517_p9)
}
 0x262   :  { %277 = dma.vmem_to_hbm [thread:$0]  %s272_s2, 256, %s608_s3, [#allocation4], %s528_s22, %s528_s22, %s529_s23  }
 0x263   :  { %525 = dma.done.wait [#allocation4], 256  }
 0x264   :  { %526 = vsyncadd [#allocation4], 4294967040 }
 0x265   :  { %281 = vsyncpa [#allocation3], 1 }
 0x266   :  { %282 = vsyncpa [#allocation6], 1 }
 0x267   :  { %283 = vsyncpa [#allocation4], 1 }

</bundles_post_ra>
